<compile_context>
chip_gen: v5e
topology: v5e:2x2
jax: 0.10.0
libtpu: 0.0.40
codegen_flags: <defaults>
</compile_context>

<pallas_src>
import jax
import jax.numpy as jnp
from jax import lax
from jax.experimental import pallas as pl
from jax.experimental.pallas import tpu as pltpu

EPS = 1e-5  # nn.LayerNorm default


def _round_up(x, m):
    return (x + m - 1) // m * m


# ---------------------------------------------------------------------------
# Kernel bodies
# ---------------------------------------------------------------------------
def _ln_normalize(x):
    """Row-wise LayerNorm normalization (no affine) over the last dim.
    f32 statistics, one-pass variance (two independent reductions)."""
    xf = x.astype(jnp.float32)
    mean = jnp.mean(xf, axis=-1, keepdims=True)
    mean_sq = jnp.mean(xf * xf, axis=-1, keepdims=True)
    var = mean_sq - mean * mean
    return (xf - mean) * lax.rsqrt(var + EPS)


def _prenorm_single_kernel(x_ref, w_ref, b_ref, o_ref):
    y = _ln_normalize(x_ref[...])                 # (tm, D) f32
    y = y.astype(w_ref.dtype)                     # native MXU dtype (bf16 when W is bf16)
    out = jnp.dot(y, w_ref[...], preferred_element_type=jnp.float32) + b_ref[...]
    o_ref[...] = out.astype(o_ref.dtype)


def _prenorm_pair_kernel(x_ref, x2_ref, w_ref, b_ref, o_ref):
    y = _ln_normalize(x_ref[...]) + _ln_normalize(x2_ref[...])
    y = y.astype(w_ref.dtype)
    out = jnp.dot(y, w_ref[...], preferred_element_type=jnp.float32) + b_ref[...]
    o_ref[...] = out.astype(o_ref.dtype)


# ---------------------------------------------------------------------------
# Generation-aware VMEM budget & tile selection
# ---------------------------------------------------------------------------
def _vmem_budgets():
    """Returns (vmem_limit_bytes, tiling_budget_bytes)."""
    kind = ""
    try:
        kind = jax.devices()[0].device_kind.lower()
    except Exception:
        pass
    if ("v5" in kind) or ("v6" in kind):            # 128 MiB physical VMEM
        return 96 * 1024 * 1024, 80 * 1024 * 1024
    return 48 * 1024 * 1024, 40 * 1024 * 1024       # v7x (64 MiB) / unknown: conservative


def _pick_tiles(M, D, Dout, n_streams, x_isz, w_isz, o_isz, budget_bytes, tile_m_max):
    # Dout tiling: bounds the resident W block (critical on v7x's 64 MiB VMEM)
    # and keeps stores lane-dense (256 is a 128-multiple, matches v6e/v7x MXU).
    # NOTE: at real model dims Dout should be a multiple of 128; the tiny demo
    # Dout=32 produces masked stores (perf-only, semantics unaffected).
    if Dout > 256 and D * Dout * w_isz > (8 << 20):
        tn = 256
    else:
        tn = Dout

    def vmem_bytes(tm_):
        streams = 2 * n_streams * tm_ * D * x_isz       # double-buffered x (+x2)
        w_blk = 2 * D * tn * w_isz                       # worst case double-buffered
        out_blk = 2 * tm_ * tn * o_isz
        return streams + w_blk + out_blk + 2 * tn * 4

    tm = tile_m_max
    while tm > 8 and vmem_bytes(tm) > budget_bytes:
        tm //= 2
    tm = max(8, (tm // 8) * 8)
    if M > 8:
        # Never exceed M (block <= array) and keep >= 2 row blocks so the grid
        # pipelines and can shard across both v7x TensorCores.
        tm = min(tm, (M // 8) * 8, _round_up(-(-M // 2), 8))
    return tm, tn


# ---------------------------------------------------------------------------
# Fused PreNorm + linear wrapper
# ---------------------------------------------------------------------------
def prenorm_linear(x, gamma, beta, W, bias, x2=None, tile_m=1024):
    """fn(LN(x)) or fn(LN(x), LN(x2)) with fn(a[, b]) = (a [+ b]) @ W + bias,
    as a single pallas_call. gamma/beta are folded into W/bias in the wrapper."""
    B, N, D = x.shape
    Dout = W.shape[1]
    M = B * N

    x_flat = x.reshape(M, D)
    x2_flat = None if x2 is None else x2.reshape(M, D)

    # Degenerate tiny-M fallback only (<= 7 rows); normal sizes are NOT padded.
    M_k = M
    if M < 8:
        pad = ((0, 8 - M), (0, 0))
        x_flat = jnp.pad(x_flat, pad)
        if x2_flat is not None:
            x2_flat = jnp.pad(x2_flat, pad)
        M_k = 8

    # Fold the LN affine into the linear:
    #   (z*g + b) @ W + bias == z @ (g[:,None]*W) + (b @ W) + bias
    # The pair path gets 2*(b @ W) since both inputs go through self.norm.
    gamma_f = gamma.reshape(D).astype(jnp.float32)
    beta_f = beta.reshape(D).astype(jnp.float32)
    W_f32 = W.astype(jnp.float32)
    W_fold = (gamma_f[:, None] * W_f32).astype(W.dtype)
    k_beta = 2.0 if x2 is not None else 1.0
    bias_fold = (k_beta * (beta_f @ W_f32)
                 + bias.reshape(Dout).astype(jnp.float32)).reshape(1, Dout)

    n_streams = 1 if x2_flat is None else 2
    vmem_limit, budget = _vmem_budgets()
    tm, tn = _pick_tiles(M_k, D, Dout, n_streams,
                         jnp.dtype(x.dtype).itemsize,
                         jnp.dtype(W_fold.dtype).itemsize,
                         jnp.dtype(x.dtype).itemsize,
                         budget, tile_m)

    num_i = pl.cdiv(M_k, tm)    # row blocks  (edge block clipped by Pallas — no pad)
    num_j = pl.cdiv(Dout, tn)   # output-column blocks

    def build_and_run(single_buffer_resident):
        resident_kw = {}
        if single_buffer_resident:
            resident_kw = dict(pipeline_mode=pl.Buffered(1))

        x_spec = pl.BlockSpec((tm, D), lambda i, j: (i, 0))
        w_spec = pl.BlockSpec((D, tn), lambda i, j: (0, j), **resident_kw)
        b_spec = pl.BlockSpec((1, tn), lambda i, j: (0, j), **resident_kw)
        out_spec = pl.BlockSpec((tm, tn), lambda i, j: (i, j))

        if x2_flat is None:
            kernel = _prenorm_single_kernel
            in_specs = [x_spec, w_spec, b_spec]
            args = (x_flat, W_fold, bias_fold)
        else:
            kernel = _prenorm_pair_kernel
            in_specs = [x_spec, x_spec, w_spec, b_spec]
            args = (x_flat, x2_flat, W_fold, bias_fold)

        return pl.pallas_call(
            kernel,
            out_shape=jax.ShapeDtypeStruct((M_k, Dout), x.dtype),
            grid_spec=pltpu.PrefetchScalarGridSpec(
                num_scalar_prefetch=0,
                grid=(num_i, num_j),          # j innermost -> x row tile reused across j
                in_specs=in_specs,
                out_specs=out_spec,
            ),
            compiler_params=pltpu.CompilerParams(
                dimension_semantics=("parallel", "parallel"),
                vmem_limit_bytes=vmem_limit,
            ),
        )(*args)

    # Single-buffer W/bias when their block index is constant across the grid
    # (halves their VMEM footprint — matters on v7x's 64 MiB VMEM). Fall back
    # to default double-buffering if the installed Pallas rejects Buffered(1).
    out = None
    if num_j == 1 and hasattr(pl, "Buffered"):
        try:
            out = build_and_run(True)
        except Exception:
            out = None
    if out is None:
        out = build_and_run(False)

    if M_k != M:
        out = out[:M]
    return out.reshape(B, N, Dout)


# ---------------------------------------------------------------------------
# PreNorm module
# ---------------------------------------------------------------------------
class PreNorm:
    """Pallas port of PreNorm. As in the PyTorch source, forward applies
    self.norm to BOTH x and x2; norm2 is constructed but never used.
    Output dtype follows x.dtype (standard PyTorch behavior when params share x's dtype)."""

    def __init__(self, dim, W, bias):
        # nn.LayerNorm(dim) default init: weight = 1, bias = 0
        self.norm_gamma = jnp.ones((dim,), jnp.float32)
        self.norm_beta = jnp.zeros((dim,), jnp.float32)
        # norm2 exists in __init__ but is unused in forward (matches PyTorch)
        self.norm2_gamma = jnp.ones((dim,), jnp.float32)
        self.norm2_beta = jnp.zeros((dim,), jnp.float32)
        self.W = W
        self.bias = bias

    def __call__(self, x, x2=None):
        # TODO(synk): a truly arbitrary wrapped `fn` cannot be fused into the
        # pallas_call; here fn is the synthetic linear projection (a [+ b]) @ W + bias.
        return prenorm_linear(x, self.norm_gamma, self.norm_beta,
                              self.W, self.bias, x2=x2)


# ---------------------------------------------------------------------------
if __name__ == "__main__":
    key = jax.random.PRNGKey(0)
    B, N, D = 2, 8, 32
    Dout = 32

    k1, k2, k3, k4, k5, k6 = jax.random.split(key, 6)
    x = jax.random.normal(k1, (B, N, D), jnp.float32)
    x2 = jax.random.normal(k2, (B, N, D), jnp.float32)
    W = jax.random.normal(k3, (D, Dout), jnp.float32) * (1.0 / jnp.sqrt(D))
    bias = jax.random.normal(k4, (Dout,), jnp.float32) * 0.01

    prenorm = PreNorm(D, W, bias)
    # non-trivial LayerNorm affine params to exercise the gamma/beta folding
    prenorm.norm_gamma = 1.0 + 0.1 * jax.random.normal(k5, (D,), jnp.float32)
    prenorm.norm_beta = 0.1 * jax.random.normal(k6, (D,), jnp.float32)

    out1 = prenorm(x)          # fn(norm(x))
    out2 = prenorm(x, x2)      # fn(norm(x), norm(x2))
    jax.block_until_ready((out1, out2))

    # plain-JAX reference
    def ln_ref(v, g, b):
        m = jnp.mean(v, axis=-1, keepdims=True)
        var = jnp.mean((v - m) ** 2, axis=-1, keepdims=True)
        return (v - m) / jnp.sqrt(var + EPS) * g + b

    g, b = prenorm.norm_gamma, prenorm.norm_beta
    ref1 = ln_ref(x, g, b) @ W + bias
    ref2 = (ln_ref(x, g, b) + ln_ref(x2, g, b)) @ W + bias
    assert jnp.allclose(out1, ref1, atol=1e-4, rtol=1e-4), "single-input path mismatch"
    assert jnp.allclose(out2, ref2, atol=1e-4, rtol=1e-4), "two-input path mismatch"

    print("KERNEL_OK")
</pallas_src>

<mosaic_0001>
module attributes {stable_mosaic.version = 11 : i64} {
  func.func @_prenorm_single_kernel(%arg0: i32, %arg1: i32, %arg2: memref<8x32xf32, #tpu.memory_space<vmem>>, %arg3: memref<32x32xf32, #tpu.memory_space<vmem>>, %arg4: memref<1x32xf32, #tpu.memory_space<vmem>>, %arg5: memref<8x32xf32, #tpu.memory_space<vmem>>) attributes {dimension_semantics = [#tpu.dimension_semantics<parallel>, #tpu.dimension_semantics<parallel>], iteration_bounds = array<i64: 2, 1>, scalar_prefetch = 0 : i64, scratch_operands = 0 : i64, tpu.core_type = #tpu.core_type<tc>, window_params = [{transform_indices = @transform_0, window_bounds = array<i64: 8, 32>}, {pipeline_mode = #tpu.pipeline_mode<synchronous>, transform_indices = @transform_1, window_bounds = array<i64: 32, 32>}, {pipeline_mode = #tpu.pipeline_mode<synchronous>, transform_indices = @transform_2, window_bounds = array<i64: 1, 32>}, {transform_indices = @transform_3, window_bounds = array<i64: 8, 32>}]} {
    %c0 = arith.constant 0 : index
    %c0_0 = arith.constant 0 : index
    %0 = vector.load %arg2[%c0, %c0_0] : memref<8x32xf32, #tpu.memory_space<vmem>>, vector<8x32xf32>
    %cst = arith.constant dense<0.000000e+00> : vector<8xf32>
    %1 = vector.multi_reduction <add>, %0, %cst [1] : vector<8x32xf32> to vector<8xf32>
    %2 = vector.shape_cast %1 : vector<8xf32> to vector<8x1xf32>
    %cst_1 = arith.constant 3.200000e+01 : f32
    %3 = vector.broadcast %cst_1 : f32 to vector<8x1xf32>
    %4 = arith.divf %2, %3 : vector<8x1xf32>
    %5 = arith.mulf %0, %0 : vector<8x32xf32>
    %cst_2 = arith.constant dense<0.000000e+00> : vector<8xf32>
    %6 = vector.multi_reduction <add>, %5, %cst_2 [1] : vector<8x32xf32> to vector<8xf32>
    %7 = vector.shape_cast %6 : vector<8xf32> to vector<8x1xf32>
    %cst_3 = arith.constant 3.200000e+01 : f32
    %8 = vector.broadcast %cst_3 : f32 to vector<8x1xf32>
    %9 = arith.divf %7, %8 : vector<8x1xf32>
    %10 = arith.mulf %4, %4 : vector<8x1xf32>
    %11 = arith.subf %9, %10 : vector<8x1xf32>
    %12 = vector.broadcast %4 : vector<8x1xf32> to vector<8x32xf32>
    %13 = arith.subf %0, %12 : vector<8x32xf32>
    %cst_4 = arith.constant 9.99999974E-6 : f32
    %14 = vector.broadcast %cst_4 : f32 to vector<8x1xf32>
    %15 = arith.addf %11, %14 : vector<8x1xf32>
    %16 = math.rsqrt %15 : vector<8x1xf32>
    %17 = vector.broadcast %16 : vector<8x1xf32> to vector<8x32xf32>
    %18 = arith.mulf %13, %17 : vector<8x32xf32>
    %c0_5 = arith.constant 0 : index
    %c0_6 = arith.constant 0 : index
    %19 = vector.load %arg3[%c0_5, %c0_6] : memref<32x32xf32, #tpu.memory_space<vmem>>, vector<32x32xf32>
    %cst_7 = arith.constant dense<0.000000e+00> : vector<8x32xf32>
    %20 = tpu.matmul %18, %19, %cst_7 {dimension_numbers = #tpu.dot_dimension_numbers<[1], [0], [0], [1], [0, 0, 1, 1], [], []>} : vector<8x32xf32>, vector<32x32xf32>, vector<8x32xf32> -> vector<8x32xf32>
    %c0_8 = arith.constant 0 : index
    %c0_9 = arith.constant 0 : index
    %21 = vector.load %arg4[%c0_8, %c0_9] : memref<1x32xf32, #tpu.memory_space<vmem>>, vector<1x32xf32>
    %22 = vector.broadcast %21 : vector<1x32xf32> to vector<8x32xf32>
    %23 = arith.addf %20, %22 : vector<8x32xf32>
    %c0_10 = arith.constant 0 : index
    %c0_11 = arith.constant 0 : index
    %24 = vector.load %arg5[%c0_10, %c0_11] : memref<8x32xf32, #tpu.memory_space<vmem>>, vector<8x32xf32>
    tpu.vector_store %arg5[%c0_10, %c0_11], %23 {strides = array<i32>} : memref<8x32xf32, #tpu.memory_space<vmem>>, vector<8x32xf32>,
    return
  }
  func.func @transform_0(%arg0: i32, %arg1: i32) -> (i32, i32) {
    %c0_i32 = arith.constant 0 : i32
    %c0_i32_0 = arith.constant 0 : i32
    return %arg0, %c0_i32 : i32, i32
  }
  func.func @transform_1(%arg0: i32, %arg1: i32) -> (i32, i32) {
    %c0_i32 = arith.constant 0 : i32
    %c0_i32_0 = arith.constant 0 : i32
    return %c0_i32, %arg1 : i32, i32
  }
  func.func @transform_2(%arg0: i32, %arg1: i32) -> (i32, i32) {
    %c0_i32 = arith.constant 0 : i32
    %c0_i32_0 = arith.constant 0 : i32
    return %c0_i32, %arg1 : i32, i32
  }
  func.func @transform_3(%arg0: i32, %arg1: i32) -> (i32, i32) {
    %c0_i32 = arith.constant 0 : i32
    return %arg0, %arg1 : i32, i32
  }
}

module attributes {stable_mosaic.version = 11 : i64} {
  func.func @_prenorm_single_kernel(%arg0: i32, %arg1: i32, %arg2: memref<8x32xf32, #tpu.memory_space<vmem>>, %arg3: memref<32x32xf32, #tpu.memory_space<vmem>>, %arg4: memref<1x32xf32, #tpu.memory_space<vmem>>, %arg5: memref<8x32xf32, #tpu.memory_space<vmem>>) attributes {dimension_semantics = [#tpu.dimension_semantics<parallel>, #tpu.dimension_semantics<parallel>], iteration_bounds = array<i64: 2, 1>, scalar_prefetch = 0 : i64, scratch_operands = 0 : i64, tpu.core_type = #tpu.core_type<tc>, window_params = [{transform_indices = @transform_0, window_bounds = array<i64: 8, 32>}, {transform_indices = @transform_1, window_bounds = array<i64: 32, 32>}, {transform_indices = @transform_2, window_bounds = array<i64: 1, 32>}, {transform_indices = @transform_3, window_bounds = array<i64: 8, 32>}]} {
    %c0 = arith.constant 0 : index
    %c0_0 = arith.constant 0 : index
    %0 = vector.load %arg2[%c0, %c0_0] : memref<8x32xf32, #tpu.memory_space<vmem>>, vector<8x32xf32>
    %cst = arith.constant dense<0.000000e+00> : vector<8xf32>
    %1 = vector.multi_reduction <add>, %0, %cst [1] : vector<8x32xf32> to vector<8xf32>
    %2 = vector.shape_cast %1 : vector<8xf32> to vector<8x1xf32>
    %cst_1 = arith.constant 3.200000e+01 : f32
    %3 = vector.broadcast %cst_1 : f32 to vector<8x1xf32>
    %4 = arith.divf %2, %3 : vector<8x1xf32>
    %5 = arith.mulf %0, %0 : vector<8x32xf32>
    %cst_2 = arith.constant dense<0.000000e+00> : vector<8xf32>
    %6 = vector.multi_reduction <add>, %5, %cst_2 [1] : vector<8x32xf32> to vector<8xf32>
    %7 = vector.shape_cast %6 : vector<8xf32> to vector<8x1xf32>
    %cst_3 = arith.constant 3.200000e+01 : f32
    %8 = vector.broadcast %cst_3 : f32 to vector<8x1xf32>
    %9 = arith.divf %7, %8 : vector<8x1xf32>
    %10 = arith.mulf %4, %4 : vector<8x1xf32>
    %11 = arith.subf %9, %10 : vector<8x1xf32>
    %12 = vector.broadcast %4 : vector<8x1xf32> to vector<8x32xf32>
    %13 = arith.subf %0, %12 : vector<8x32xf32>
    %cst_4 = arith.constant 9.99999974E-6 : f32
    %14 = vector.broadcast %cst_4 : f32 to vector<8x1xf32>
    %15 = arith.addf %11, %14 : vector<8x1xf32>
    %16 = math.rsqrt %15 : vector<8x1xf32>
    %17 = vector.broadcast %16 : vector<8x1xf32> to vector<8x32xf32>
    %18 = arith.mulf %13, %17 : vector<8x32xf32>
    %c0_5 = arith.constant 0 : index
    %c0_6 = arith.constant 0 : index
    %19 = vector.load %arg3[%c0_5, %c0_6] : memref<32x32xf32, #tpu.memory_space<vmem>>, vector<32x32xf32>
    %cst_7 = arith.constant dense<0.000000e+00> : vector<8x32xf32>
    %20 = tpu.matmul %18, %19, %cst_7 {dimension_numbers = #tpu.dot_dimension_numbers<[1], [0], [0], [1], [0, 0, 1, 1], [], []>} : vector<8x32xf32>, vector<32x32xf32>, vector<8x32xf32> -> vector<8x32xf32>
    %c0_8 = arith.constant 0 : index
    %c0_9 = arith.constant 0 : index
    %21 = vector.load %arg4[%c0_8, %c0_9] : memref<1x32xf32, #tpu.memory_space<vmem>>, vector<1x32xf32>
    %22 = vector.broadcast %21 : vector<1x32xf32> to vector<8x32xf32>
    %23 = arith.addf %20, %22 : vector<8x32xf32>
    %c0_10 = arith.constant 0 : index
    %c0_11 = arith.constant 0 : index
    %24 = vector.load %arg5[%c0_10, %c0_11] : memref<8x32xf32, #tpu.memory_space<vmem>>, vector<8x32xf32>
    tpu.vector_store %arg5[%c0_10, %c0_11], %23 {strides = array<i32>} : memref<8x32xf32, #tpu.memory_space<vmem>>, vector<8x32xf32>,
    return
  }
  func.func @transform_0(%arg0: i32, %arg1: i32) -> (i32, i32) {
    %c0_i32 = arith.constant 0 : i32
    %c0_i32_0 = arith.constant 0 : i32
    return %arg0, %c0_i32 : i32, i32
  }
  func.func @transform_1(%arg0: i32, %arg1: i32) -> (i32, i32) {
    %c0_i32 = arith.constant 0 : i32
    %c0_i32_0 = arith.constant 0 : i32
    return %c0_i32, %arg1 : i32, i32
  }
  func.func @transform_2(%arg0: i32, %arg1: i32) -> (i32, i32) {
    %c0_i32 = arith.constant 0 : i32
    %c0_i32_0 = arith.constant 0 : i32
    return %c0_i32, %arg1 : i32, i32
  }
  func.func @transform_3(%arg0: i32, %arg1: i32) -> (i32, i32) {
    %c0_i32 = arith.constant 0 : i32
    return %arg0, %arg1 : i32, i32
  }
}

</mosaic_0001>

<bundles_post_ra>
// kernel: tpu_custom_call.1
= control target key start
LH: loop header
LB: loop body
LE: loop exit
PB: predicated region body
PF: predicated region fallthrough
CT: control target
= control target key end

     0   :  { %8 = vsyncpa [#allocation3], 0  ;;  %s849_s0 = inlined_call_operand.hbm [shape: f32[16,32], index: 0, kind: input, shape index: {}]   ;;  %s850_s1 = inlined_call_operand.hbm [shape: f32[32,32], index: 1, kind: input, shape index: {}]   ;;  %s851_s2 = inlined_call_operand.vmem [shape: f32[1,32], index: 2, kind: input, shape index: {}]   ;;  %s852_s3 = inlined_call_operand.hbm [shape: f32[16,32], index: 3, kind: output, shape index: {}]  }
   0x1   :  { %10 = vsyncpa [#allocation3 + $0x1], 0 }
   0x2   :  { %11 = vsyncpa [#allocation6], 0 }
   0x3   :  { %12 = vsyncpa [#allocation4], 0 }
   0x4   :  { %14 = vsyncpa [#allocation4 + $0x1], 0  ;;  %s695_s12 = smov 0   ;;  %s697_s13 = smov 0  }
   0x5   :  { %s699_s14 = smov 0   ;;  %s701_s15 = smov 0  }
   0x6   :  { %s703_s16 = smov 0   ;;  %s705_s17 = smov 0  }
   0x7 LB: > { %s425_s18 = sadd.s32 4294967295, %s669_s17   ;;  %p427_p0 = scmp.ge.s32.totalorder %s669_s17, 1  ;;  %s669_s17 = sphi %s705_s17, %s20_s17   ;;  %s665_s16 = sphi %s703_s16, %s863_s16   ;;  %s661_s15 = sphi %s701_s15, %s862_s15   ;;  %s657_s14 = sphi %s699_s14, %s861_s14   ;;  %s653_s13 = sphi %s697_s13, %s860_s13   ;;  %s649_s12 = sphi %s695_s12, %s859_s12  }
   0x8   : > { %p727_p1 = scmp.eq.s32.totalorder %s425_s18, 0  ;;  %p143_p2 = scmp.lt.s32.totalorder %s669_s17, 3 }
   0x9   : > { %s156_s22 = sshll.u32 %s850_s1, 4  ;;  %s671_s24 = smov [#allocation5]   ;;  %s157_s22 = int_to_ptr.hbm [resolvable:$true] %s156_s22 }
   0xa   : > { %p735_p3 = pnand %p427_p0, %p143_p2  ;;  %s158_s25 = sshll.u32 %s671_s24, 4  ;;  %s159_s25 = int_to_ptr.vmem [resolvable:$true] %s158_s25 }
   0xb   : > { %p430_p6 = scmp.ge.s32.totalorder %s669_s17, 2  ;;  %s672_s26 = smov 128  }
   0xc   : > { %p450_p4 = pneg %p735_p3  ;;  %s673_s27 = smov 8  }
   0xd   : > { %s426_s28 = sadd.s32 4294967294, %s669_s17   ;;  %s32_s29 = sadd.s32 1, %s665_s16 }
   0xe   : > { %p451_p5 = pnand %p450_p4, %p727_p1  ;;  %s39_s30 = sadd.s32 1, %s657_s14 }
   0xf   : > { %p34_p7 = scmp.ge.s32.totalorder %s32_s29, 2  ;;  %p46_p8 = scmp.ne.s32.totalorder %s657_s14, %s653_s13 }
  0x10   : > { %453 = dma.hbm_to_vmem [thread:$0]  (!%p451_p5), %s157_s22, 512, %s159_s25, [#allocation6], %s672_s26, %s672_s26, %s673_s27  }
  0x11   : > { %p47_p9 = scmp.eq.s32.totalorder %s669_s17, 0  ;;  %p52_p10 = scmp.ne.s32.totalorder %s653_s13, %s649_s12 }
  0x12   : > { %s865_s29 = smov (%p34_p7, %s32_s29), 0  ;;  %p130_p13 = scmp.eq.s32.totalorder %s425_s18, 1 }
  0x13   : > { %p754_p11 = por %p47_p9, %p46_p8  ;;  %p760_p12 = por %p727_p1, %p52_p10 }
  0x14   : > { %s36_s6 = ssub.s32 %s665_s16, %s865_s29  ;;  %p136_p2 = scmp.eq.s32.totalorder %s426_s28, 1 }
  0x15   : > { %p37_p0 = scmp.eq.s32.totalorder %s36_s6, 0  ;;  %p766_p4 = por %p130_p13, %p46_p8 }
  0x16   : > { %p463_p5 = scmp.lt.s32.totalorder %s669_s17, 2  ;;  %p774_p7 = por %p136_p2, %p52_p10 }
  0x17   : > { %s772_s8 = scalar_select %p37_p0, %s657_s14, %s39_s30  }
  0x18   : > { %s178_s10 = sand.u32 1, %s657_s14   ;;  %s432_s20 = sshll.u32 %s665_s16, 3 }
  0x19   : > { %s431_s11 = sshll.u32 %s178_s10, 3  ;;  %s186_s18 = scalar_lea.hbm %s849_s0, %s432_s20 }
  0x1a   : > { %s182_s24 = scalar_lea.vmem [#allocation2], %s431_s11  ;;  %s188_s26 = sshll.u32 %s186_s18, 4  ;;  %s189_s26 = int_to_ptr.hbm [resolvable:$true] %s188_s26 }
  0x1b   : > { %s190_s25 = sshll.u32 %s182_s24, 4  ;;  %p455_p8 = pnand %p463_p5, %p754_p11  ;;  %s191_s25 = int_to_ptr.vmem [resolvable:$true] %s190_s25 }
  0x1c   : > { %s179_s27 = scalar_lea.sflag [#allocation3], %s178_s10  ;;  %199 = sbr.rel (%p735_p3) target bundleno = 319 (0x13f), region = 32 }
  0x1d   : > { %457 = dma.hbm_to_vmem [thread:$0]  (!%p455_p8), %s189_s26, 128, %s191_s25, %s179_s27  }
  0x1e   : > { %s788_s28 = sand.u32 (!%p735_p3), 1, %s653_s13  }
  0x1f   : > { %s434_s30 = sshll.u32 (!%p735_p3), %s788_s28, 3  ;;  %s202_s6 = scalar_lea.sflag (!%p735_p3), [#allocation3], %s788_s28 }
  0x20   : > { %s205_s11 = scalar_lea.vmem (!%p735_p3), [#allocation2], %s434_s30 }
  0x21   : > { %636 = dma.done.wait (%p760_p12), %s202_s6, 128  }
  0x22   : > { %638 = vsyncadd (%p760_p12), %s202_s6, 4294967168 }
  0x23   : > { %640 = dma.done.wait (%p727_p1), [#allocation6], 512  }
  0x24   : > { %642 = vsyncadd (%p727_p1), [#allocation6], 4294966784  ;;  %vm241_vm0 = vcmask 261120   ;;  %v240_v0 = vld [vmem:[%s205_s11] sm:$0xff]  ;;  %v674_v4 = vmov 32.0   ;;  %v274_v11 = vld [vmem:[#allocation5 + $0x8] sm:$0xff] }
  0x25   : > { %v242_v1 = vsel %vm241_vm0, %v240_v0, 0.0  ;;  %v253_v2 = vmul.f32 %v240_v0, %v240_v0  ;;  %519 = vrcp.f32 %v674_v4  ;;  %v276_v9 = vld [vmem:[#allocation5 + $0x18] sm:$0xff]  ;;  %v275_v10 = vld [vmem:[#allocation5 + $0x10] sm:$0xff]  ;;  %v273_v13 = vld [vmem:[#allocation5] sm:$0xff]  ;;  %s439_s19 = sshll.u32 %s661_s15, 3  ;;  %s236_s21 = scalar_lea.vmem [#allocation7], %s434_s30 }
  0x26   : > { %243 = vadd.xlane.f32.xlu0 %v242_v1  ;;  %296 = vmatpush.msra.mxu0 %v276_v9  ;;  %s317_s5 = scalar_lea.hbm %s852_s3, %s439_s19  ;;  %v518_v31 = vld [vmem:[%s851_s2] ss:$0 sm:$0xff]  ;;  %s319_s22 = sshll.u32 %s236_s21, 4  ;;  %s320_s22 = int_to_ptr.vmem [resolvable:$true] %s319_s22 }
  0x27   : > { %v254_v3 = vsel %vm241_vm0, %v253_v2, 0.0  ;;  %s321_s18 = sshll.u32 %s317_s5, 4  ;;  %s306_s15 = scalar_lea.sflag [#allocation4], %s788_s28  ;;  %s322_s18 = int_to_ptr.hbm [resolvable:$true] %s321_s18 }
  0x28   : > { %297 = vmatpush.msra.mxu0 %v275_v10  ;;  %s597_s24 = sshra.s32 %s322_s18, 4  ;;  %s603_s30 = scalar_lea.hbm %s852_s3, 16  ;;  %s598_s24 = int_to_ptr.hbm [resolvable:$true] %s597_s24 }
  0x29   : > { %s599_s25 = scalar_lea.hbm %s598_s24, 8  ;;  %p604_p10 = scmp.lt.s32.totalorder %s598_s24, %s852_s3 }
  0x2a   : > { %298 = vmatpush.msra.mxu0 %v274_v11  ;;  %p600_p1 = scmp.ne.s32.totalorder %s598_s24, %s599_s25  ;;  %p605_p11 = scmp.lt.s32.totalorder %s603_s30, %s599_s25 }
  0x2b   : > { %v520_v5 = vpop.eup %519 }
  0x2c   : > { %v246_v6 = vmul.f32 32.0, %v520_v5  ;;  %vm250_vm1 = vweird.f32 %v520_v5  ;;  %299 = vmatpush.msra.mxu0 %v273_v13  ;;  %p601_p3 = pnand %p600_p1, %p766_p4  ;;  %p606_p12 = por %p605_p11, %p604_p10 }
  0x2e   : > { %255 = vadd.xlane.f32.xlu0 %v254_v3  ;;  %v247_v7 = vsub.f32 1.0, %v246_v6  ;;  %p602_p9 = pneg %p601_p3 }
  0x30   : > { %v248_v8 = vmul.f32 %v520_v5, %v247_v7  ;;  %p607_p13 = pnand %p606_p12, %p602_p9 }
  0x32   : > { %v249_v12 = vadd.f32 %v520_v5, %v248_v8 }
  0x34   : > { %v251_v15 = vsel %vm250_vm1, %v520_v5, %v249_v12 }
  0x99   : > { %v244_v14 = vpop.xlane.xlu0 %243 }
  0x9a   : > { %v252_v16 = vmul.f32 %v251_v15, %v244_v14 }
  0x9c   : > { %v258_v18 = vmul.f32 %v252_v16, %v252_v16  ;;  %v260_v28 = vsub.f32 %v240_v0, %v252_v16 }
  0xa1   : > { %v256_v17 = vpop.xlane.xlu0 %255 }
  0xa2   : > { %v257_v19 = vmul.f32 %v256_v17, %v251_v15 }
  0xa4   : > { %v259_v20 = vsub.f32 %v257_v19, %v258_v18 }
  0xa6   : > { %v261_v21 = vadd.f32 1e-05, %v259_v20 }
  0xa8   : > { %521 = vrsqrt.f32 %v261_v21  ;;  %vm268_vm3 = vweird.f32 %v261_v21 }
  0xae   : > { %v522_v22 = vpop.eup %521 }
  0xaf   : > { %v263_v23 = vmul.f32 %v522_v22, %v261_v21  ;;  %vm269_vm2 = vweird.f32 %v522_v22 }
  0xb0   : > { %vm270_vm4 = vmor %vm268_vm3, %vm269_vm2 }
  0xb1   : > { %v264_v24 = vmul.f32 %v522_v22, %v263_v23 }
  0xb3   : > { %v265_v25 = vmul.f32 0.5, %v264_v24 }
  0xb5   : > { %v266_v26 = vsub.f32 1.5, %v265_v25 }
  0xb7   : > { %v267_v27 = vmul.f32 %v522_v22, %v266_v26 }
  0xb9   : > { %v271_v29 = vsel %vm270_vm4, %v522_v22, %v267_v27 }
  0xba   : > { %v272_v30 = vmul.f32 %v271_v29, %v260_v28 }
  0xbc   : > { %437 = vmatmul.msk.f32.vlgmr.msra.gmra.mxu0 %vm241_vm0, %v272_v30 }
 0x139   : > { %v301_v32 = vpop.f32.mrf.mxu0 }
 0x13a   : > { %v302_v33 = vadd.f32 %v518_v31, %v301_v32 }
 0x13c   : > { %304 = vst.msk [vmem:[%s236_s21] sm:$0xff] %vm241_vm0, %v302_v33 }
 0x13d   : > { %610 = shalt.err (!%p607_p13)
}
 0x13e   : > { %448 = dma.vmem_to_hbm [thread:$0]  (%p766_p4), %s320_s22, 128, %s322_s18, %s306_s15  }
 0x13f PF: > { %s333_s28 = sand.u32 1, %s649_s12   ;;  %p459_p0 = pnand %p430_p6, %p774_p7 }
 0x140   : > { %s334_s19 = scalar_lea.sflag [#allocation4], %s333_s28 }
 0x141   : > { %p460_p2 = pneg %p459_p0 }
 0x143   : > { %644 = dma.done.wait (%p460_p2), %s334_s19, 128  }
 0x144   : > { %646 = vsyncadd (%p460_p2), %s334_s19, 4294967168  ;;  %s20_s17 = sadd.s32 1, %s669_s17   ;;  %s859_s12 = smov %s653_s13 }
 0x145   : > { %p17_p5 = scmp.ge.s32.totalorder %s20_s17, 4   ;;  %s860_s13 = smov %s657_s14 }
 0x146   : > { %s861_s14 = smov %s772_s8  ;;  %s862_s15 = smov %s665_s16 }
 0x147   : > { %s863_s16 = smov %s865_s29  ;;  %19 = sbr.rel (!%p17_p5) target bundleno = 7 (0x7), region = 85 }
 0x14c   :  { %340 = vsyncpa [#allocation3], 1 }
 0x14d   :  { %342 = vsyncpa [#allocation3 + $0x1], 1 }
 0x14e   :  { %343 = vsyncpa [#allocation6], 1 }
 0x14f   :  { %344 = vsyncpa [#allocation4], 1 }
 0x150   :  { %346 = vsyncpa [#allocation4 + $0x1], 1 }

// kernel: tpu_custom_call.1
= control target key start
LH: loop header
LB: loop body
LE: loop exit
PB: predicated region body
PF: predicated region fallthrough
CT: control target
= control target key end

     0   :  { %8 = vsyncpa [#allocation3], 0  ;;  %s849_s0 = inlined_call_operand.hbm [shape: f32[16,32], index: 0, kind: input, shape index: {}]   ;;  %s850_s1 = inlined_call_operand.hbm [shape: f32[32,32], index: 1, kind: input, shape index: {}]   ;;  %s851_s2 = inlined_call_operand.vmem [shape: f32[1,32], index: 2, kind: input, shape index: {}]   ;;  %s852_s3 = inlined_call_operand.hbm [shape: f32[16,32], index: 3, kind: output, shape index: {}]  }
   0x1   :  { %10 = vsyncpa [#allocation3 + $0x1], 0 }
   0x2   :  { %11 = vsyncpa [#allocation6], 0 }
   0x3   :  { %12 = vsyncpa [#allocation4], 0 }
   0x4   :  { %14 = vsyncpa [#allocation4 + $0x1], 0  ;;  %s695_s12 = smov 0   ;;  %s697_s13 = smov 0  }
   0x5   :  { %s699_s14 = smov 0   ;;  %s701_s15 = smov 0  }
   0x6   :  { %s703_s16 = smov 0   ;;  %s705_s17 = smov 0  }
   0x7 LB: > { %s425_s18 = sadd.s32 4294967295, %s669_s17   ;;  %p427_p0 = scmp.ge.s32.totalorder %s669_s17, 1  ;;  %s669_s17 = sphi %s705_s17, %s20_s17   ;;  %s665_s16 = sphi %s703_s16, %s863_s16   ;;  %s661_s15 = sphi %s701_s15, %s862_s15   ;;  %s657_s14 = sphi %s699_s14, %s861_s14   ;;  %s653_s13 = sphi %s697_s13, %s860_s13   ;;  %s649_s12 = sphi %s695_s12, %s859_s12  }
   0x8   : > { %p727_p1 = scmp.eq.s32.totalorder %s425_s18, 0  ;;  %p143_p2 = scmp.lt.s32.totalorder %s669_s17, 3 }
   0x9   : > { %s156_s22 = sshll.u32 %s850_s1, 4  ;;  %s671_s24 = smov [#allocation5]   ;;  %s157_s22 = int_to_ptr.hbm [resolvable:$true] %s156_s22 }
   0xa   : > { %p735_p3 = pnand %p427_p0, %p143_p2  ;;  %s158_s25 = sshll.u32 %s671_s24, 4  ;;  %s159_s25 = int_to_ptr.vmem [resolvable:$true] %s158_s25 }
   0xb   : > { %p430_p6 = scmp.ge.s32.totalorder %s669_s17, 2  ;;  %s672_s26 = smov 128  }
   0xc   : > { %p450_p4 = pneg %p735_p3  ;;  %s673_s27 = smov 8  }
   0xd   : > { %s426_s28 = sadd.s32 4294967294, %s669_s17   ;;  %s32_s29 = sadd.s32 1, %s665_s16 }
   0xe   : > { %p451_p5 = pnand %p450_p4, %p727_p1  ;;  %s39_s30 = sadd.s32 1, %s657_s14 }
   0xf   : > { %p34_p7 = scmp.ge.s32.totalorder %s32_s29, 2  ;;  %p46_p8 = scmp.ne.s32.totalorder %s657_s14, %s653_s13 }
  0x10   : > { %453 = dma.hbm_to_vmem [thread:$0]  (!%p451_p5), %s157_s22, 512, %s159_s25, [#allocation6], %s672_s26, %s672_s26, %s673_s27  }
  0x11   : > { %p47_p9 = scmp.eq.s32.totalorder %s669_s17, 0  ;;  %p52_p10 = scmp.ne.s32.totalorder %s653_s13, %s649_s12 }
  0x12   : > { %s865_s29 = smov (%p34_p7, %s32_s29), 0  ;;  %p130_p13 = scmp.eq.s32.totalorder %s425_s18, 1 }
  0x13   : > { %p754_p11 = por %p47_p9, %p46_p8  ;;  %p760_p12 = por %p727_p1, %p52_p10 }
  0x14   : > { %s36_s6 = ssub.s32 %s665_s16, %s865_s29  ;;  %p136_p2 = scmp.eq.s32.totalorder %s426_s28, 1 }
  0x15   : > { %p37_p0 = scmp.eq.s32.totalorder %s36_s6, 0  ;;  %p766_p4 = por %p130_p13, %p46_p8 }
  0x16   : > { %p463_p5 = scmp.lt.s32.totalorder %s669_s17, 2  ;;  %p774_p7 = por %p136_p2, %p52_p10 }
  0x17   : > { %s772_s8 = scalar_select %p37_p0, %s657_s14, %s39_s30  }
  0x18   : > { %s178_s10 = sand.u32 1, %s657_s14   ;;  %s432_s20 = sshll.u32 %s665_s16, 3 }
  0x19   : > { %s431_s11 = sshll.u32 %s178_s10, 3  ;;  %s186_s18 = scalar_lea.hbm %s849_s0, %s432_s20 }
  0x1a   : > { %s182_s24 = scalar_lea.vmem [#allocation2], %s431_s11  ;;  %s188_s26 = sshll.u32 %s186_s18, 4  ;;  %s189_s26 = int_to_ptr.hbm [resolvable:$true] %s188_s26 }
  0x1b   : > { %s190_s25 = sshll.u32 %s182_s24, 4  ;;  %p455_p8 = pnand %p463_p5, %p754_p11  ;;  %s191_s25 = int_to_ptr.vmem [resolvable:$true] %s190_s25 }
  0x1c   : > { %s179_s27 = scalar_lea.sflag [#allocation3], %s178_s10  ;;  %199 = sbr.rel (%p735_p3) target bundleno = 319 (0x13f), region = 32 }
  0x1d   : > { %457 = dma.hbm_to_vmem [thread:$0]  (!%p455_p8), %s189_s26, 128, %s191_s25, %s179_s27  }
  0x1e   : > { %s788_s28 = sand.u32 (!%p735_p3), 1, %s653_s13  }
  0x1f   : > { %s434_s30 = sshll.u32 (!%p735_p3), %s788_s28, 3  ;;  %s202_s6 = scalar_lea.sflag (!%p735_p3), [#allocation3], %s788_s28 }
  0x20   : > { %s205_s11 = scalar_lea.vmem (!%p735_p3), [#allocation2], %s434_s30 }
  0x21   : > { %636 = dma.done.wait (%p760_p12), %s202_s6, 128  }
  0x22   : > { %638 = vsyncadd (%p760_p12), %s202_s6, 4294967168 }
  0x23   : > { %640 = dma.done.wait (%p727_p1), [#allocation6], 512  }
  0x24   : > { %642 = vsyncadd (%p727_p1), [#allocation6], 4294966784  ;;  %vm241_vm0 = vcmask 261120   ;;  %v240_v0 = vld [vmem:[%s205_s11] sm:$0xff]  ;;  %v674_v4 = vmov 32.0   ;;  %v274_v11 = vld [vmem:[#allocation5 + $0x8] sm:$0xff] }
  0x25   : > { %v242_v1 = vsel %vm241_vm0, %v240_v0, 0.0  ;;  %v253_v2 = vmul.f32 %v240_v0, %v240_v0  ;;  %519 = vrcp.f32 %v674_v4  ;;  %v276_v9 = vld [vmem:[#allocation5 + $0x18] sm:$0xff]  ;;  %v275_v10 = vld [vmem:[#allocation5 + $0x10] sm:$0xff]  ;;  %v273_v13 = vld [vmem:[#allocation5] sm:$0xff]  ;;  %s439_s19 = sshll.u32 %s661_s15, 3  ;;  %s236_s21 = scalar_lea.vmem [#allocation7], %s434_s30 }
  0x26   : > { %243 = vadd.xlane.f32.xlu0 %v242_v1  ;;  %296 = vmatpush.msra.mxu0 %v276_v9  ;;  %s317_s5 = scalar_lea.hbm %s852_s3, %s439_s19  ;;  %v518_v31 = vld [vmem:[%s851_s2] ss:$0 sm:$0xff]  ;;  %s319_s22 = sshll.u32 %s236_s21, 4  ;;  %s320_s22 = int_to_ptr.vmem [resolvable:$true] %s319_s22 }
  0x27   : > { %v254_v3 = vsel %vm241_vm0, %v253_v2, 0.0  ;;  %s321_s18 = sshll.u32 %s317_s5, 4  ;;  %s306_s15 = scalar_lea.sflag [#allocation4], %s788_s28  ;;  %s322_s18 = int_to_ptr.hbm [resolvable:$true] %s321_s18 }
  0x28   : > { %297 = vmatpush.msra.mxu0 %v275_v10  ;;  %s597_s24 = sshra.s32 %s322_s18, 4  ;;  %s603_s30 = scalar_lea.hbm %s852_s3, 16  ;;  %s598_s24 = int_to_ptr.hbm [resolvable:$true] %s597_s24 }
  0x29   : > { %s599_s25 = scalar_lea.hbm %s598_s24, 8  ;;  %p604_p10 = scmp.lt.s32.totalorder %s598_s24, %s852_s3 }
  0x2a   : > { %298 = vmatpush.msra.mxu0 %v274_v11  ;;  %p600_p1 = scmp.ne.s32.totalorder %s598_s24, %s599_s25  ;;  %p605_p11 = scmp.lt.s32.totalorder %s603_s30, %s599_s25 }
  0x2b   : > { %v520_v5 = vpop.eup %519 }
  0x2c   : > { %v246_v6 = vmul.f32 32.0, %v520_v5  ;;  %vm250_vm1 = vweird.f32 %v520_v5  ;;  %299 = vmatpush.msra.mxu0 %v273_v13  ;;  %p601_p3 = pnand %p600_p1, %p766_p4  ;;  %p606_p12 = por %p605_p11, %p604_p10 }
  0x2e   : > { %255 = vadd.xlane.f32.xlu0 %v254_v3  ;;  %v247_v7 = vsub.f32 1.0, %v246_v6  ;;  %p602_p9 = pneg %p601_p3 }
  0x30   : > { %v248_v8 = vmul.f32 %v520_v5, %v247_v7  ;;  %p607_p13 = pnand %p606_p12, %p602_p9 }
  0x32   : > { %v249_v12 = vadd.f32 %v520_v5, %v248_v8 }
  0x34   : > { %v251_v15 = vsel %vm250_vm1, %v520_v5, %v249_v12 }
  0x99   : > { %v244_v14 = vpop.xlane.xlu0 %243 }
  0x9a   : > { %v252_v16 = vmul.f32 %v251_v15, %v244_v14 }
  0x9c   : > { %v258_v18 = vmul.f32 %v252_v16, %v252_v16  ;;  %v260_v28 = vsub.f32 %v240_v0, %v252_v16 }
  0xa1   : > { %v256_v17 = vpop.xlane.xlu0 %255 }
  0xa2   : > { %v257_v19 = vmul.f32 %v256_v17, %v251_v15 }
  0xa4   : > { %v259_v20 = vsub.f32 %v257_v19, %v258_v18 }
  0xa6   : > { %v261_v21 = vadd.f32 1e-05, %v259_v20 }
  0xa8   : > { %521 = vrsqrt.f32 %v261_v21  ;;  %vm268_vm3 = vweird.f32 %v261_v21 }
  0xae   : > { %v522_v22 = vpop.eup %521 }
  0xaf   : > { %v263_v23 = vmul.f32 %v522_v22, %v261_v21  ;;  %vm269_vm2 = vweird.f32 %v522_v22 }
  0xb0   : > { %vm270_vm4 = vmor %vm268_vm3, %vm269_vm2 }
  0xb1   : > { %v264_v24 = vmul.f32 %v522_v22, %v263_v23 }
  0xb3   : > { %v265_v25 = vmul.f32 0.5, %v264_v24 }
  0xb5   : > { %v266_v26 = vsub.f32 1.5, %v265_v25 }
  0xb7   : > { %v267_v27 = vmul.f32 %v522_v22, %v266_v26 }
  0xb9   : > { %v271_v29 = vsel %vm270_vm4, %v522_v22, %v267_v27 }
  0xba   : > { %v272_v30 = vmul.f32 %v271_v29, %v260_v28 }
  0xbc   : > { %437 = vmatmul.msk.f32.vlgmr.msra.gmra.mxu0 %vm241_vm0, %v272_v30 }
 0x139   : > { %v301_v32 = vpop.f32.mrf.mxu0 }
 0x13a   : > { %v302_v33 = vadd.f32 %v518_v31, %v301_v32 }
 0x13c   : > { %304 = vst.msk [vmem:[%s236_s21] sm:$0xff] %vm241_vm0, %v302_v33 }
 0x13d   : > { %610 = shalt.err (!%p607_p13)
}
 0x13e   : > { %448 = dma.vmem_to_hbm [thread:$0]  (%p766_p4), %s320_s22, 128, %s322_s18, %s306_s15  }
 0x13f PF: > { %s333_s28 = sand.u32 1, %s649_s12   ;;  %p459_p0 = pnand %p430_p6, %p774_p7 }
 0x140   : > { %s334_s19 = scalar_lea.sflag [#allocation4], %s333_s28 }
 0x141   : > { %p460_p2 = pneg %p459_p0 }
 0x143   : > { %644 = dma.done.wait (%p460_p2), %s334_s19, 128  }
 0x144   : > { %646 = vsyncadd (%p460_p2), %s334_s19, 4294967168  ;;  %s20_s17 = sadd.s32 1, %s669_s17   ;;  %s859_s12 = smov %s653_s13 }
 0x145   : > { %p17_p5 = scmp.ge.s32.totalorder %s20_s17, 4   ;;  %s860_s13 = smov %s657_s14 }
 0x146   : > { %s861_s14 = smov %s772_s8  ;;  %s862_s15 = smov %s665_s16 }
 0x147   : > { %s863_s16 = smov %s865_s29  ;;  %19 = sbr.rel (!%p17_p5) target bundleno = 7 (0x7), region = 85 }
 0x14c   :  { %340 = vsyncpa [#allocation3], 1 }
 0x14d   :  { %342 = vsyncpa [#allocation3 + $0x1], 1 }
 0x14e   :  { %343 = vsyncpa [#allocation6], 1 }
 0x14f   :  { %344 = vsyncpa [#allocation4], 1 }
 0x150   :  { %346 = vsyncpa [#allocation4 + $0x1], 1 }

</bundles_post_ra>
